<compile_context>
chip_gen: v7x
topology: tpu7x:2x2x1
jax: 0.10.0
libtpu: 0.0.40
codegen_flags: <defaults>
</compile_context>

<pallas_src>
import functools

import jax
import jax.numpy as jnp
from jax.experimental import pallas as pl
from jax.experimental.pallas import tpu as pltpu


_IN_DIM = 7
_OUT_DIM = 3
_OUT_PAD = 8      # narrow lane pad (was 128): one contiguous store, 32 B/row
_DIMS = [7, 64, 128, 64, 3]


def _round_up(n, m):
    return ((n + m - 1) // m) * m


def _num_tensorcores():
    """Best-effort TensorCores-per-chip (v7x=2, v5e/v6e=1).  Never raises."""
    try:
        info = pltpu.get_tpu_info()
        for attr in ("num_cores", "core_count", "num_tensorcores",
                     "tensorcores_per_chip"):
            v = getattr(info, attr, None)
            if isinstance(v, int) and v > 0:
                return v
    except Exception:
        pass
    try:
        v = getattr(jax.devices()[0], "num_cores", None)
        if isinstance(v, int) and v > 0:
            return v
    except Exception:
        pass
    return 1


def _mlp_kernel(x_ref,
                w1_ref, b1_ref,
                w2_ref, b2_ref,
                w3_ref, b3_ref,
                w4_ref, b4_ref,
                o_ref):
    # Whole forward pass (4 matmuls + biases + ReLUs) in one grid step.
    # Matmul operands may be bf16 (f32 accumulation via preferred_element_type);
    # bias-add / ReLU stay in f32.
    cdt = w1_ref.dtype

    # Fused input cast: x arrives as f32 [bb, 7]; cast here, K=7 fed directly
    # to the MXU (Mosaic pads the contraction dim internally).
    x = x_ref[...].astype(cdt)

    h = jnp.dot(x, w1_ref[...], preferred_element_type=jnp.float32) + b1_ref[...]
    h = jnp.maximum(h, 0.0).astype(cdt)

    h = jnp.dot(h, w2_ref[...], preferred_element_type=jnp.float32) + b2_ref[...]
    h = jnp.maximum(h, 0.0).astype(cdt)

    h = jnp.dot(h, w3_ref[...], preferred_element_type=jnp.float32) + b3_ref[...]
    h = jnp.maximum(h, 0.0).astype(cdt)

    out = jnp.dot(h, w4_ref[...], preferred_element_type=jnp.float32) + b4_ref[...]
    o_ref[...] = out.astype(o_ref.dtype)


def ik_fcnn_forward(x, params, *, block_batch=4096, compute_dtype=jnp.bfloat16):
    """x: [B, 7] float32.  params: dict of w1..w4 / b1..b4.  Returns [B, 3] f32."""
    B, in_dim = x.shape
    assert in_dim == _IN_DIM

    ncores = _num_tensorcores()

    # ---- batch tile / grid selection --------------------------------------
    # Tile is a multiple of 128 (lane-dense rows for the MXU) and large enough
    # to amortize the ~0.35us per-step overhead.  On 2-TC chips keep the grid
    # even so both TensorCores get equal work; on 1-TC chips never split a
    # batch that fits one tile (grid is a serial loop there).
    cap = max(128, _round_up(min(int(block_batch), 4096), 128))
    B128 = _round_up(B, 128)

    if B128 <= cap:
        if ncores >= 2 and B128 >= 256:
            grid_n = 2
            bb = _round_up(pl.cdiv(B, 2), 128)
        else:
            grid_n = 1
            bb = B128
    else:
        grid_n = pl.cdiv(B128, cap)
        if ncores >= 2 and grid_n % 2 == 1:
            grid_n += 1
        bb = _round_up(pl.cdiv(B, grid_n), 128)

    B_pad = grid_n * bb
    grid = (grid_n,)

    cdt = compute_dtype

    # ---- prep operands ------------------------------------------------------
    # Weights [in, out] cast to the matmul dtype; biases kept f32.
    # Only the tiny w4/b4 get lane padding (3 -> 8); x is NOT pre-padded/cast
    # (that work is fused into the kernel).
    w1 = params["w1"].astype(cdt)                                   # [7, 64]
    w2 = params["w2"].astype(cdt)                                   # [64, 128]
    w3 = params["w3"].astype(cdt)                                   # [128, 64]
    w4 = jnp.pad(params["w4"],
                 ((0, 0), (0, _OUT_PAD - _OUT_DIM))).astype(cdt)    # [64, 8]
    b1 = params["b1"].astype(jnp.float32)
    b2 = params["b2"].astype(jnp.float32)
    b3 = params["b3"].astype(jnp.float32)
    b4 = jnp.pad(params["b4"],
                 ((0, 0), (0, _OUT_PAD - _OUT_DIM))).astype(jnp.float32)

    # Batch padding only when needed (no-op when B is already a tile multiple).
    x_in = x if B_pad == B else jnp.pad(x, ((0, B_pad - B), (0, 0)))

    # Weights / biases are tiny (~68 KB total) -> constant index_map keeps them
    # VMEM-resident with no re-DMA across grid steps.
    def full_spec(shape):
        return pl.BlockSpec(shape, lambda i: (0, 0))

    # Advisory cost so XLA schedules surrounding ops sensibly.
    flops = 2 * B_pad * sum(_DIMS[i] * _DIMS[i + 1] for i in range(4))
    bytes_accessed = (B_pad * _IN_DIM * 4 + B_pad * _OUT_PAD * 4
                      + sum(int(a.size) * a.dtype.itemsize
                            for a in (w1, b1, w2, b2, w3, b3, w4, b4)))
    cost = pl.CostEstimate(flops=int(flops), transcendentals=0,
                           bytes_accessed=int(bytes_accessed))

    out_pad = pl.pallas_call(
        _mlp_kernel,
        out_shape=jax.ShapeDtypeStruct((B_pad, _OUT_PAD), jnp.float32),
        grid_spec=pl.GridSpec(
            grid=grid,
            in_specs=[
                pl.BlockSpec((bb, _IN_DIM), lambda i: (i, 0)),   # x tile, f32 [bb,7]
                full_spec(w1.shape), full_spec(b1.shape),
                full_spec(w2.shape), full_spec(b2.shape),
                full_spec(w3.shape), full_spec(b3.shape),
                full_spec(w4.shape), full_spec(b4.shape),
            ],
            out_specs=pl.BlockSpec((bb, _OUT_PAD), lambda i: (i, 0)),
        ),
        compiler_params=pltpu.CompilerParams(
            dimension_semantics=("parallel",),
            vmem_limit_bytes=32 * 1024 * 1024,
        ),
        cost_estimate=cost,
    )(x_in, w1, b1, w2, b2, w3, b3, w4, b4)

    # Slice away batch padding and the 8-wide lane pad of the 3-wide output.
    return out_pad[:B, :_OUT_DIM].astype(jnp.float32)


def init_params(key):
    """Deterministic init mirroring nn.Linear default (uniform +/- 1/sqrt(fan_in))."""
    params = {}
    for idx in range(4):
        fan_in, fan_out = _DIMS[idx], _DIMS[idx + 1]
        key, kw, kb = jax.random.split(key, 3)
        bound = 1.0 / jnp.sqrt(jnp.float32(fan_in))
        # weight stored [in, out] (transposed vs. PyTorch storage, same math)
        params[f"w{idx + 1}"] = jax.random.uniform(
            kw, (fan_in, fan_out), jnp.float32, -bound, bound)
        # bias kept 2D [1, out] for clean TPU layout / broadcasting
        params[f"b{idx + 1}"] = jax.random.uniform(
            kb, (1, fan_out), jnp.float32, -bound, bound)
    return params


def _reference_forward(x, params):
    h = jnp.maximum(x @ params["w1"] + params["b1"], 0.0)
    h = jnp.maximum(h @ params["w2"] + params["b2"], 0.0)
    h = jnp.maximum(h @ params["w3"] + params["b3"], 0.0)
    return h @ params["w4"] + params["b4"]


if __name__ == "__main__":
    key = jax.random.PRNGKey(0)
    key, kx = jax.random.split(key)

    batch = 16  # small batch; 7 input angles/pose features per sample
    x = jax.random.normal(kx, (batch, 7), jnp.float32)
    params = init_params(key)

    ref = _reference_forward(x, params)

    # --- exact-math check: f32 compute path must match the pure-JAX reference ---
    fwd_f32 = jax.jit(functools.partial(
        ik_fcnn_forward, compute_dtype=jnp.float32))
    out_f32 = jax.block_until_ready(fwd_f32(x, params))
    assert out_f32.shape == (batch, 3), out_f32.shape
    assert jnp.allclose(out_f32, ref, atol=1e-5, rtol=1e-5), "f32 mismatch vs reference"

    # --- default (bf16 matmuls, f32 accumulation): looser tolerance vs f32 ref ---
    fwd = jax.jit(functools.partial(ik_fcnn_forward))
    out = jax.block_until_ready(fwd(x, params))
    assert out.shape == (batch, 3), out.shape
    assert jnp.allclose(out, ref, atol=5e-2, rtol=5e-2), "bf16 mismatch vs reference"

    print("KERNEL_OK")
</pallas_src>

<mosaic_0001>
module attributes {stable_mosaic.version = 11 : i64} {
  func.func @_mlp_kernel(%arg0: i32, %arg1: memref<128x7xf32, #tpu.memory_space<vmem>>, %arg2: memref<7x64xf32, #tpu.memory_space<vmem>>, %arg3: memref<1x64xf32, #tpu.memory_space<vmem>>, %arg4: memref<64x128xf32, #tpu.memory_space<vmem>>, %arg5: memref<1x128xf32, #tpu.memory_space<vmem>>, %arg6: memref<128x64xf32, #tpu.memory_space<vmem>>, %arg7: memref<1x64xf32, #tpu.memory_space<vmem>>, %arg8: memref<64x8xf32, #tpu.memory_space<vmem>>, %arg9: memref<1x8xf32, #tpu.memory_space<vmem>>, %arg10: memref<128x8xf32, #tpu.memory_space<vmem>>) attributes {dimension_semantics = [#tpu.dimension_semantics<parallel>], iteration_bounds = array<i64: 1>, scalar_prefetch = 0 : i64, scratch_operands = 0 : i64, tpu.core_type = #tpu.core_type<tc>, window_params = [{transform_indices = @transform_0, window_bounds = array<i64: 128, 7>}, {pipeline_mode = #tpu.pipeline_mode<synchronous>, transform_indices = @transform_1, window_bounds = array<i64: 7, 64>}, {pipeline_mode = #tpu.pipeline_mode<synchronous>, transform_indices = @transform_2, window_bounds = array<i64: 1, 64>}, {pipeline_mode = #tpu.pipeline_mode<synchronous>, transform_indices = @transform_3, window_bounds = array<i64: 64, 128>}, {pipeline_mode = #tpu.pipeline_mode<synchronous>, transform_indices = @transform_4, window_bounds = array<i64: 1, 128>}, {pipeline_mode = #tpu.pipeline_mode<synchronous>, transform_indices = @transform_5, window_bounds = array<i64: 128, 64>}, {pipeline_mode = #tpu.pipeline_mode<synchronous>, transform_indices = @transform_6, window_bounds = array<i64: 1, 64>}, {pipeline_mode = #tpu.pipeline_mode<synchronous>, transform_indices = @transform_7, window_bounds = array<i64: 64, 8>}, {pipeline_mode = #tpu.pipeline_mode<synchronous>, transform_indices = @transform_8, window_bounds = array<i64: 1, 8>}, {transform_indices = @transform_9, window_bounds = array<i64: 128, 8>}]} {
    %c0 = arith.constant 0 : index
    %c0_0 = arith.constant 0 : index
    %0 = vector.load %arg1[%c0, %c0_0] : memref<128x7xf32, #tpu.memory_space<vmem>>, vector<128x7xf32>
    %c0_1 = arith.constant 0 : index
    %c0_2 = arith.constant 0 : index
    %1 = vector.load %arg2[%c0_1, %c0_2] : memref<7x64xf32, #tpu.memory_space<vmem>>, vector<7x64xf32>
    %cst = arith.constant dense<0.000000e+00> : vector<128x64xf32>
    %2 = tpu.matmul %0, %1, %cst {dimension_numbers = #tpu.dot_dimension_numbers<[1], [0], [0], [1], [0, 0, 1, 1], [], []>} : vector<128x7xf32>, vector<7x64xf32>, vector<128x64xf32> -> vector<128x64xf32>
    %c0_3 = arith.constant 0 : index
    %c0_4 = arith.constant 0 : index
    %3 = vector.load %arg3[%c0_3, %c0_4] : memref<1x64xf32, #tpu.memory_space<vmem>>, vector<1x64xf32>
    %4 = vector.broadcast %3 : vector<1x64xf32> to vector<128x64xf32>
    %5 = arith.addf %2, %4 : vector<128x64xf32>
    %cst_5 = arith.constant 0.000000e+00 : f32
    %6 = vector.broadcast %cst_5 : f32 to vector<128x64xf32>
    %7 = arith.maximumf %5, %6 : vector<128x64xf32>
    %c0_6 = arith.constant 0 : index
    %c0_7 = arith.constant 0 : index
    %8 = vector.load %arg4[%c0_6, %c0_7] : memref<64x128xf32, #tpu.memory_space<vmem>>, vector<64x128xf32>
    %cst_8 = arith.constant dense<0.000000e+00> : vector<128x128xf32>
    %9 = tpu.matmul %7, %8, %cst_8 {dimension_numbers = #tpu.dot_dimension_numbers<[1], [0], [0], [1], [0, 0, 1, 1], [], []>} : vector<128x64xf32>, vector<64x128xf32>, vector<128x128xf32> -> vector<128x128xf32>
    %c0_9 = arith.constant 0 : index
    %c0_10 = arith.constant 0 : index
    %10 = vector.load %arg5[%c0_9, %c0_10] : memref<1x128xf32, #tpu.memory_space<vmem>>, vector<1x128xf32>
    %11 = vector.broadcast %10 : vector<1x128xf32> to vector<128x128xf32>
    %12 = arith.addf %9, %11 : vector<128x128xf32>
    %cst_11 = arith.constant 0.000000e+00 : f32
    %13 = vector.broadcast %cst_11 : f32 to vector<128x128xf32>
    %14 = arith.maximumf %12, %13 : vector<128x128xf32>
    %c0_12 = arith.constant 0 : index
    %c0_13 = arith.constant 0 : index
    %15 = vector.load %arg6[%c0_12, %c0_13] : memref<128x64xf32, #tpu.memory_space<vmem>>, vector<128x64xf32>
    %cst_14 = arith.constant dense<0.000000e+00> : vector<128x64xf32>
    %16 = tpu.matmul %14, %15, %cst_14 {dimension_numbers = #tpu.dot_dimension_numbers<[1], [0], [0], [1], [0, 0, 1, 1], [], []>} : vector<128x128xf32>, vector<128x64xf32>, vector<128x64xf32> -> vector<128x64xf32>
    %c0_15 = arith.constant 0 : index
    %c0_16 = arith.constant 0 : index
    %17 = vector.load %arg7[%c0_15, %c0_16] : memref<1x64xf32, #tpu.memory_space<vmem>>, vector<1x64xf32>
    %18 = vector.broadcast %17 : vector<1x64xf32> to vector<128x64xf32>
    %19 = arith.addf %16, %18 : vector<128x64xf32>
    %cst_17 = arith.constant 0.000000e+00 : f32
    %20 = vector.broadcast %cst_17 : f32 to vector<128x64xf32>
    %21 = arith.maximumf %19, %20 : vector<128x64xf32>
    %c0_18 = arith.constant 0 : index
    %c0_19 = arith.constant 0 : index
    %22 = vector.load %arg8[%c0_18, %c0_19] : memref<64x8xf32, #tpu.memory_space<vmem>>, vector<64x8xf32>
    %cst_20 = arith.constant dense<0.000000e+00> : vector<128x8xf32>
    %23 = tpu.matmul %21, %22, %cst_20 {dimension_numbers = #tpu.dot_dimension_numbers<[1], [0], [0], [1], [0, 0, 1, 1], [], []>} : vector<128x64xf32>, vector<64x8xf32>, vector<128x8xf32> -> vector<128x8xf32>
    %c0_21 = arith.constant 0 : index
    %c0_22 = arith.constant 0 : index
    %24 = vector.load %arg9[%c0_21, %c0_22] : memref<1x8xf32, #tpu.memory_space<vmem>>, vector<1x8xf32>
    %25 = vector.broadcast %24 : vector<1x8xf32> to vector<128x8xf32>
    %26 = arith.addf %23, %25 : vector<128x8xf32>
    %c0_23 = arith.constant 0 : index
    %c0_24 = arith.constant 0 : index
    %27 = vector.load %arg10[%c0_23, %c0_24] : memref<128x8xf32, #tpu.memory_space<vmem>>, vector<128x8xf32>
    tpu.vector_store %arg10[%c0_23, %c0_24], %26 {strides = array<i32>} : memref<128x8xf32, #tpu.memory_space<vmem>>, vector<128x8xf32>,
    return
  }
  func.func @transform_0(%arg0: i32) -> (i32, i32) {
    %c0_i32 = arith.constant 0 : i32
    %c0_i32_0 = arith.constant 0 : i32
    return %arg0, %c0_i32 : i32, i32
  }
  func.func @transform_1(%arg0: i32) -> (i32, i32) {
    %c0_i32 = arith.constant 0 : i32
    %c0_i32_0 = arith.constant 0 : i32
    %c0_i32_1 = arith.constant 0 : i32
    return %c0_i32, %c0_i32_0 : i32, i32
  }
  func.func @transform_2(%arg0: i32) -> (i32, i32) {
    %c0_i32 = arith.constant 0 : i32
    %c0_i32_0 = arith.constant 0 : i32
    %c0_i32_1 = arith.constant 0 : i32
    return %c0_i32, %c0_i32_0 : i32, i32
  }
  func.func @transform_3(%arg0: i32) -> (i32, i32) {
    %c0_i32 = arith.constant 0 : i32
    %c0_i32_0 = arith.constant 0 : i32
    %c0_i32_1 = arith.constant 0 : i32
    return %c0_i32, %c0_i32_0 : i32, i32
  }
  func.func @transform_4(%arg0: i32) -> (i32, i32) {
    %c0_i32 = arith.constant 0 : i32
    %c0_i32_0 = arith.constant 0 : i32
    %c0_i32_1 = arith.constant 0 : i32
    return %c0_i32, %c0_i32_0 : i32, i32
  }
  func.func @transform_5(%arg0: i32) -> (i32, i32) {
    %c0_i32 = arith.constant 0 : i32
    %c0_i32_0 = arith.constant 0 : i32
    %c0_i32_1 = arith.constant 0 : i32
    return %c0_i32, %c0_i32_0 : i32, i32
  }
  func.func @transform_6(%arg0: i32) -> (i32, i32) {
    %c0_i32 = arith.constant 0 : i32
    %c0_i32_0 = arith.constant 0 : i32
    %c0_i32_1 = arith.constant 0 : i32
    return %c0_i32, %c0_i32_0 : i32, i32
  }
  func.func @transform_7(%arg0: i32) -> (i32, i32) {
    %c0_i32 = arith.constant 0 : i32
    %c0_i32_0 = arith.constant 0 : i32
    %c0_i32_1 = arith.constant 0 : i32
    return %c0_i32, %c0_i32_0 : i32, i32
  }
  func.func @transform_8(%arg0: i32) -> (i32, i32) {
    %c0_i32 = arith.constant 0 : i32
    %c0_i32_0 = arith.constant 0 : i32
    %c0_i32_1 = arith.constant 0 : i32
    return %c0_i32, %c0_i32_0 : i32, i32
  }
  func.func @transform_9(%arg0: i32) -> (i32, i32) {
    %c0_i32 = arith.constant 0 : i32
    %c0_i32_0 = arith.constant 0 : i32
    return %arg0, %c0_i32 : i32, i32
  }
}

</mosaic_0001>

<bundles_post_ra>
// kernel: ik_fcnn_forward.1
= control target key start
LH: loop header
LB: loop body
LE: loop exit
PB: predicated region body
PF: predicated region fallthrough
CT: control target
= control target key end

     0   :  { %vm105_vm0 = vcmask 1046528   ;;  %vm56_vm1 = vcmask 56320   ;;  %vm285_vm2 = vcmask 523264   ;;  %vm887_vm3 = vcmask 64512   ;;  %s1631_s1 = inlined_call_operand.vmem [shape: f32[7,64], index: 1, kind: input, shape index: {}]   ;;  %s1632_s0 = inlined_call_operand.vmem [shape: f32[128,7], index: 0, kind: input, shape index: {}]   ;;  %s1633_s3 = inlined_call_operand.vmem [shape: f32[64,128], index: 3, kind: input, shape index: {}]   ;;  %s1634_s5 = inlined_call_operand.vmem [shape: f32[128,64], index: 5, kind: input, shape index: {}]   ;;  %s1635_s2 = inlined_call_operand.vmem [shape: f32[1,64], index: 2, kind: input, shape index: {}]   ;;  %s1636_s7 = inlined_call_operand.vmem [shape: f32[64,8], index: 7, kind: input, shape index: {}]   ;;  %s1637_s4 = inlined_call_operand.vmem [shape: f32[1,128], index: 4, kind: input, shape index: {}]   ;;  %s1638_s6 = inlined_call_operand.vmem [shape: f32[1,64], index: 6, kind: input, shape index: {}]   ;;  %s1639_s8 = inlined_call_operand.vmem [shape: f32[1,8], index: 8, kind: input, shape index: {}]   ;;  %s1640_s9 = inlined_call_operand.vmem [shape: f32[128,8], index: 9, kind: output, shape index: {}]  }
   0x1   :  { %v48_v0 = vld [vmem:[%s1631_s1] sm:$0x7f]  ;;  %v33_v2 = vld [vmem:[%s1632_s0 + $0x8] sm:$0xff]  ;;  %v34_v3 = vld [vmem:[%s1632_s0 + $0x10] sm:$0xff] }
   0x2   :  { %v32_v1 = vld [vmem:[%s1632_s0] sm:$0xff]  ;;  %1058 = vmatprep.subr.msk.mxu0 %vm105_vm0, %v48_v0  ;;  %v35_v4 = vld [vmem:[%s1632_s0 + $0x18] sm:$0xff]  ;;  %v271_v7 = vld [vmem:[%s1633_s3 + $0x8] sm:$0xff] }
   0x3   :  { %1060 = vmatprep.mubr.msk.f32.mxu0 %vm56_vm1, %v32_v1  ;;  %1059 = vmatpush3.msk.msra.mxu0 %vm105_vm0, %v48_v0  ;;  %v36_v5 = vld [vmem:[%s1632_s0 + $0x20] sm:$0xff]  ;;  %v272_v8 = vld [vmem:[%s1633_s3 + $0x10] sm:$0xff]  ;;  %v273_v9 = vld [vmem:[%s1633_s3 + $0x18] sm:$0xff] }
   0x4   :  { %1061 = vmatmul.mubr.msk.f32.vlgmr.msra.gmra.mrb[0].mxu0 %vm56_vm1, %v33_v2  ;;  %v270_v6 = vld [vmem:[%s1633_s3] sm:$0xff]  ;;  %v1224_v11 = vpack.c.bf16 %v273_v9, %v272_v8  ;;  %v37_v12 = vld [vmem:[%s1632_s0 + $0x28] sm:$0xff]  ;;  %v38_v15 = vld [vmem:[%s1632_s0 + $0x30] sm:$0xff] }
   0x5   :  { %1063 = vmatprep.mubr.msk.f32.mxu0 %vm56_vm1, %v34_v3  ;;  %v1220_v10 = vpack.c.bf16 %v271_v7, %v270_v6  ;;  %v274_v13 = vld [vmem:[%s1633_s3 + $0x20] sm:$0xff]  ;;  %v275_v14 = vld [vmem:[%s1633_s3 + $0x28] sm:$0xff]  ;;  %v39_v17 = vld [vmem:[%s1632_s0 + $0x38] sm:$0xff] }
   0x6   :  { %v1228_v16 = vpack.c.bf16 %v275_v14, %v274_v13  ;;  %v40_v18 = vld [vmem:[%s1632_s0 + $0x40] sm:$0xff]  ;;  %v41_v19 = vld [vmem:[%s1632_s0 + $0x48] sm:$0xff]  ;;  %v42_v20 = vld [vmem:[%s1632_s0 + $0x50] sm:$0xff] }
   0x7   :  { %1221 = vmatprep.subr.bf16.mxu1 %v1220_v10  ;;  %v43_v21 = vld [vmem:[%s1632_s0 + $0x58] sm:$0xff]  ;;  %v44_v22 = vld [vmem:[%s1632_s0 + $0x60] sm:$0xff]  ;;  %v45_v23 = vld [vmem:[%s1632_s0 + $0x68] sm:$0xff] }
   0x8   :  { %1064 = vmatmul.mubr.msk.f32.gmra.mrb[2].mxu0 %vm56_vm1, %v35_v4  ;;  %1223 = vmatpush3.bf16.msra.mxu1 %v1220_v10  ;;  %v46_v24 = vld [vmem:[%s1632_s0 + $0x70] sm:$0xff]  ;;  %v47_v25 = vld [vmem:[%s1632_s0 + $0x78] sm:$0xff]  ;;  %v495_v29 = vld [vmem:[%s1634_s5] sm:$0xff] }
   0x9   :  { %1066 = vmatprep.mubr.msk.f32.mxu0 %vm56_vm1, %v36_v5  ;;  %1225 = vmatprep.subr.bf16.mxu1 %v1224_v11  ;;  %v276_v26 = vld [vmem:[%s1633_s3 + $0x30] sm:$0xff]  ;;  %v277_v27 = vld [vmem:[%s1633_s3 + $0x38] sm:$0xff]  ;;  %v496_v30 = vld [vmem:[%s1634_s5 + $0x8] sm:$0xff] }
   0xa   :  { %v1232_v28 = vpack.c.bf16 %v277_v27, %v276_v26  ;;  %v497_v31 = vld [vmem:[%s1634_s5 + $0x10] sm:$0xff]  ;;  %v1236_v32 = vpack.c.bf16 %v496_v30, %v495_v29  ;;  %v498_v33 = vld [vmem:[%s1634_s5 + $0x18] sm:$0xff]  ;;  %v499_v35 = vld [vmem:[%s1634_s5 + $0x20] sm:$0xff] }
   0xb   :  { %v1240_v34 = vpack.c.bf16 %v498_v33, %v497_v31  ;;  %v500_v36 = vld [vmem:[%s1634_s5 + $0x28] sm:$0xff]  ;;  %v501_v38 = vld [vmem:[%s1634_s5 + $0x30] sm:$0xff]  ;;  %v502_v39 = vld [vmem:[%s1634_s5 + $0x38] sm:$0xff] }
   0xc   :  { %1067 = vmatmul.mubr.msk.f32.gmra.mrb[4].mxu0 %vm56_vm1, %v37_v12  ;;  %1227 = vmatpush3.bf16.msra.mxu1 %v1224_v11  ;;  %v1244_v37 = vpack.c.bf16 %v500_v36, %v499_v35  ;;  %v1248_v40 = vpack.c.bf16 %v502_v39, %v501_v38  ;;  %v503_v41 = vld [vmem:[%s1634_s5 + $0x40] sm:$0xff]  ;;  %v504_v42 = vld [vmem:[%s1634_s5 + $0x48] sm:$0xff]  ;;  %v505_v44 = vld [vmem:[%s1634_s5 + $0x50] sm:$0xff] }
   0xd   :  { %1069 = vmatprep.mubr.msk.f32.mxu0 %vm56_vm1, %v38_v15  ;;  %1229 = vmatprep.subr.bf16.mxu1 %v1228_v16  ;;  %v1252_v43 = vpack.c.bf16 %v504_v42, %v503_v41  ;;  %v506_v45 = vld [vmem:[%s1634_s5 + $0x58] sm:$0xff]  ;;  %v507_v47 = vld [vmem:[%s1634_s5 + $0x60] sm:$0xff]  ;;  %v508_v48 = vld [vmem:[%s1634_s5 + $0x68] sm:$0xff] }
   0xe   :  { %1237 = vmatprep.subr.bf16.mxu0 %v1236_v32  ;;  %v1256_v46 = vpack.c.bf16 %v506_v45, %v505_v44  ;;  %v1260_v49 = vpack.c.bf16 %v508_v48, %v507_v47  ;;  %v908_v50 = vld [vmem:[%s1635_s2] ss:$0 sm:$0xff]  ;;  %v509_v35 = vld [vmem:[%s1634_s5 + $0x70] sm:$0xff]  ;;  %v510_v36 = vld [vmem:[%s1634_s5 + $0x78] sm:$0xff] }
   0xf   :  { %1239 = vmatpush3.bf16.msra.mxu0 %v1236_v32  ;;  %v679_v38 = vld [vmem:[%s1636_s7] sm:$0xff]  ;;  %v680_v39 = vld [vmem:[%s1636_s7 + $0x8] sm:$0xff]  ;;  %v682_v42 = vld [vmem:[%s1636_s7 + $0x18] sm:$0xff] }
  0x10   :  { %1070 = vmatmul.mubr.msk.f32.gmra.mrb[6].mxu0 %vm56_vm1, %v39_v17  ;;  %1231 = vmatpush3.bf16.msra.mxu1 %v1228_v16  ;;  %v1268_v41 = vpack.c.bf16 %v680_v39, %v679_v38  ;;  %v683_v44 = vld [vmem:[%s1636_s7 + $0x20] sm:$0xff]  ;;  %v684_v45 = vld [vmem:[%s1636_s7 + $0x28] sm:$0xff] }
  0x11   :  { %1072 = vmatprep.mubr.msk.f32.mxu0 %vm56_vm1, %v40_v18  ;;  %1233 = vmatprep.subr.bf16.mxu1 %v1232_v28  ;;  %v1521_v47 = vld [vmem:[%s1637_s4] ss:$0 sm:$0xff] }
  0x12   :  { %1241 = vmatprep.subr.bf16.mxu0 %v1240_v34 }
  0x13   :  { %1243 = vmatpush3.bf16.msra.mxu0 %v1240_v34 }
  0x14   :  { %1073 = vmatmul.mubr.msk.f32.gmra.mrb[8].mxu0 %vm56_vm1, %v41_v19  ;;  %1235 = vmatpush3.bf16.msra.mxu1 %v1232_v28 }
  0x15   :  { %1075 = vmatprep.mubr.msk.f32.mxu0 %vm56_vm1, %v42_v20  ;;  %1245 = vmatprep.subr.bf16.mxu0 %v1244_v37 }
  0x16   :  { %1284 = vmatprep.subr.bf16.mxu1 %v1268_v41 }
  0x17   :  { %1247 = vmatpush3.bf16.msra.mxu0 %v1244_v37  ;;  %v1264_v37 = vpack.c.bf16 %v510_v36, %v509_v35  ;;  %v943_v35 = vld [vmem:[%s1638_s6] ss:$0 sm:$0xff] }
  0x18   :  { %1076 = vmatmul.mubr.msk.f32.gmra.mrb[10].mxu0 %vm56_vm1, %v43_v21  ;;  %1249 = vmatprep.subr.bf16.mxu0 %v1248_v40 }
  0x19   :  { %1078 = vmatprep.mubr.msk.f32.mxu0 %vm56_vm1, %v44_v22 }
  0x1b   :  { %1251 = vmatpush3.bf16.msra.mxu0 %v1248_v40  ;;  %v681_v40 = vld [vmem:[%s1636_s7 + $0x10] sm:$0xff] }
  0x1c   :  { %1079 = vmatmul.mubr.msk.f32.gmra.mrb[12].mxu0 %vm56_vm1, %v45_v23  ;;  %1253 = vmatprep.subr.bf16.mxu0 %v1252_v43 }
  0x1d   :  { %1081 = vmatprep.mubr.msk.f32.mxu0 %vm56_vm1, %v46_v24 }
  0x1f   :  { %1255 = vmatpush3.bf16.msra.mxu0 %v1252_v43  ;;  %v1272_v43 = vpack.c.bf16 %v682_v42, %v681_v40 }
  0x20   :  { %1082 = vmatmul.mubr.msk.f32.gmra.mrb[14].mxu0 %vm56_vm1, %v47_v25  ;;  %1257 = vmatprep.subr.bf16.mxu0 %v1256_v46 }
  0x23   :  { %1259 = vmatpush3.bf16.msra.mxu0 %v1256_v46  ;;  %v1276_v46 = vpack.c.bf16 %v684_v45, %v683_v44 }
  0x24   :  { %1261 = vmatprep.subr.bf16.mxu0 %v1260_v49 }
  0x27   :  { %1263 = vmatpush3.bf16.msra.mxu0 %v1260_v49 }
  0x28   :  { %1265 = vmatprep.subr.bf16.mxu0 %v1264_v37 }
  0x2b   :  { %1267 = vmatpush3.bf16.msra.mxu0 %v1264_v37 }
  0x2c   :  { %1269 = vmatprep.subr.bf16.mxu0 %v1268_v41 }
  0xd7   :  { %v1062_v51 = vpop.f32.mrb[0].mxu0 }
  0xd8   :  { %v181_v52 = vadd.f32 %v1062_v51, %v908_v50  ;;  %v175_v53 = vpop.f32.mrb[1].mxu0 }
  0xd9   :  { %v176_v54 = vadd.f32 %v908_v50, %v175_v53 }
  0xda   :  { %v255_v57 = vmax.f32 %v181_v52, 0.0 }
  0xdb   :  { %v254_v55 = vmax.f32 %v176_v54, 0.0  ;;  %v1065_v56 = vpop.f32.mrb[2].mxu0 }
  0xdc   :  { %v191_v58 = vadd.f32 %v1065_v56, %v908_v50  ;;  %v185_v59 = vpop.f32.mrb[3].mxu0 }
  0xdd   :  { %v186_v60 = vadd.f32 %v908_v50, %v185_v59  ;;  %1100 = vmatprep.mubr.msk.f32.mxu1 %vm285_vm2, %v254_v55 }
  0xde   :  { %1101 = vmatmul.mubr.msk.f32.vlgmr.msra.gmra.mrb[0].mxu1 %vm285_vm2, %v255_v57  ;;  %v257_v63 = vmax.f32 %v191_v58, 0.0 }
  0xdf   :  { %v256_v61 = vmax.f32 %v186_v60, 0.0  ;;  %v1068_v62 = vpop.f32.mrb[4].mxu0  ;;  %1288 = vmatpush3.bf16.msra.mxu1 %v1268_v41 }
  0xe0   :  { %v201_v0 = vadd.f32 %v1068_v62, %v908_v50  ;;  %v195_v1 = vpop.f32.mrb[5].mxu0  ;;  %1285 = vmatprep.subr.bf16.mxu1 %v1272_v43 }
  0xe1   :  { %v196_v2 = vadd.f32 %v908_v50, %v195_v1  ;;  %1103 = vmatprep.mubr.msk.f32.mxu1 %vm285_vm2, %v256_v61 }
  0xe2   :  { %1104 = vmatmul.mubr.msk.f32.gmra.mrb[2].mxu1 %vm285_vm2, %v257_v63  ;;  %v259_v5 = vmax.f32 %v201_v0, 0.0 }
  0xe3   :  { %v258_v3 = vmax.f32 %v196_v2, 0.0  ;;  %v1071_v4 = vpop.f32.mrb[6].mxu0  ;;  %1289 = vmatpush3.bf16.msra.mxu1 %v1272_v43 }
  0xe4   :  { %v211_v6 = vadd.f32 %v1071_v4, %v908_v50  ;;  %v205_v7 = vpop.f32.mrb[7].mxu0  ;;  %1286 = vmatprep.subr.bf16.mxu1 %v1276_v46 }
  0xe5   :  { %v206_v8 = vadd.f32 %v908_v50, %v205_v7  ;;  %1106 = vmatprep.mubr.msk.f32.mxu1 %vm285_vm2, %v258_v3 }
  0xe6   :  { %1107 = vmatmul.mubr.msk.f32.gmra.mrb[4].mxu1 %vm285_vm2, %v259_v5  ;;  %v261_v11 = vmax.f32 %v211_v6, 0.0 }
  0xe7   :  { %v260_v9 = vmax.f32 %v206_v8, 0.0  ;;  %v1074_v10 = vpop.f32.mrb[8].mxu0  ;;  %1290 = vmatpush3.bf16.msra.mxu1 %v1276_v46 }
  0xe8   :  { %v221_v12 = vadd.f32 %v1074_v10, %v908_v50  ;;  %v215_v13 = vpop.f32.mrb[9].mxu0 }
  0xe9   :  { %v216_v14 = vadd.f32 %v908_v50, %v215_v13  ;;  %1109 = vmatprep.mubr.msk.f32.mxu1 %vm285_vm2, %v260_v9 }
  0xea   :  { %1110 = vmatmul.mubr.msk.f32.gmra.mrb[6].mxu1 %vm285_vm2, %v261_v11  ;;  %v263_v17 = vmax.f32 %v221_v12, 0.0 }
  0xeb   :  { %v262_v15 = vmax.f32 %v216_v14, 0.0  ;;  %v1077_v16 = vpop.f32.mrb[10].mxu0 }
  0xec   :  { %v231_v18 = vadd.f32 %v1077_v16, %v908_v50  ;;  %v225_v19 = vpop.f32.mrb[11].mxu0 }
  0xed   :  { %v226_v20 = vadd.f32 %v908_v50, %v225_v19  ;;  %1112 = vmatprep.mubr.msk.f32.mxu1 %vm285_vm2, %v262_v15 }
  0xee   :  { %1113 = vmatmul.mubr.msk.f32.gmra.mrb[8].mxu1 %vm285_vm2, %v263_v17  ;;  %v265_v23 = vmax.f32 %v231_v18, 0.0 }
  0xef   :  { %v264_v21 = vmax.f32 %v226_v20, 0.0  ;;  %v1080_v22 = vpop.f32.mrb[12].mxu0 }
  0xf0   :  { %v241_v24 = vadd.f32 %v1080_v22, %v908_v50  ;;  %v235_v25 = vpop.f32.mrb[13].mxu0 }
  0xf1   :  { %v236_v26 = vadd.f32 %v908_v50, %v235_v25  ;;  %1115 = vmatprep.mubr.msk.f32.mxu1 %vm285_vm2, %v264_v21 }
  0xf2   :  { %1116 = vmatmul.mubr.msk.f32.gmra.mrb[10].mxu1 %vm285_vm2, %v265_v23  ;;  %v267_v29 = vmax.f32 %v241_v24, 0.0 }
  0xf3   :  { %v266_v27 = vmax.f32 %v236_v26, 0.0  ;;  %v1083_v28 = vpop.f32.mrb[14].mxu0 }
  0xf4   :  { %v251_v30 = vadd.f32 %v1083_v28, %v908_v50  ;;  %v245_v31 = vpop.f32.mrb[15].mxu0 }
  0xf5   :  { %v246_v32 = vadd.f32 %v908_v50, %v245_v31  ;;  %1118 = vmatprep.mubr.msk.f32.mxu1 %vm285_vm2, %v266_v27 }
  0xf6   :  { %1119 = vmatmul.mubr.msk.f32.gmra.mrb[12].mxu1 %vm285_vm2, %v267_v29  ;;  %v269_v34 = vmax.f32 %v251_v30, 0.0 }
  0xf7   :  { %v268_v33 = vmax.f32 %v246_v32, 0.0  ;;  %v685_v32 = vld [vmem:[%s1636_s7 + $0x30] sm:$0xff] }
  0xf9   :  { %1121 = vmatprep.mubr.msk.f32.mxu1 %vm285_vm2, %v268_v33  ;;  %v686_v33 = vld [vmem:[%s1636_s7 + $0x38] sm:$0xff] }
  0xfa   :  { %1122 = vmatmul.mubr.msk.f32.gmra.mrb[14].mxu1 %vm285_vm2, %v269_v34  ;;  %v1280_v34 = vpack.c.bf16 %v686_v33, %v685_v32 }
  0xfc   :  { %1287 = vmatprep.subr.bf16.mxu1 %v1280_v34 }
  0xfd   :  { %1291 = vmatpush3.bf16.msra.mxu1 %v1280_v34 }
 0x1b1   :  { %v1102_v48 = vpop.f32.mrb[0].mxu1 }
 0x1b2   :  { %v406_v49 = vadd.f32 %v1102_v48, %v1521_v47  ;;  %v400_v50 = vpop.f32.mrb[1].mxu1 }
 0x1b3   :  { %v401_v51 = vadd.f32 %v1521_v47, %v400_v50 }
 0x1b4   :  { %v480_v54 = vmax.f32 %v406_v49, 0.0 }
 0x1b5   :  { %v479_v52 = vmax.f32 %v401_v51, 0.0  ;;  %v1105_v53 = vpop.f32.mrb[2].mxu1 }
 0x1b6   :  { %v416_v55 = vadd.f32 %v1105_v53, %v1521_v47  ;;  %v410_v56 = vpop.f32.mrb[3].mxu1 }
 0x1b7   :  { %v411_v57 = vadd.f32 %v1521_v47, %v410_v56  ;;  %1156 = vmatprep.mubr.f32.mxu0 %v479_v52 }
 0x1b8   :  { %1157 = vmatmul.mubr.f32.vlgmr.msra.gmra.mrb[16].mxu0 %v480_v54  ;;  %v482_v60 = vmax.f32 %v416_v55, 0.0 }
 0x1b9   :  { %v481_v58 = vmax.f32 %v411_v57, 0.0  ;;  %v1108_v59 = vpop.f32.mrb[4].mxu1  ;;  %1271 = vmatpush3.bf16.msra.mxu0 %v1268_v41 }
 0x1ba   :  { %v426_v61 = vadd.f32 %v1108_v59, %v1521_v47  ;;  %v420_v62 = vpop.f32.mrb[5].mxu1  ;;  %1273 = vmatprep.subr.bf16.mxu0 %v1272_v43 }
 0x1bb   :  { %v421_v63 = vadd.f32 %v1521_v47, %v420_v62  ;;  %1159 = vmatprep.mubr.f32.mxu0 %v481_v58 }
 0x1bc   :  { %1160 = vmatmul.mubr.f32.gmra.mrb[18].mxu0 %v482_v60  ;;  %v484_v2 = vmax.f32 %v426_v61, 0.0 }
 0x1bd   :  { %v483_v0 = vmax.f32 %v421_v63, 0.0  ;;  %v1111_v1 = vpop.f32.mrb[6].mxu1  ;;  %1275 = vmatpush3.bf16.msra.mxu0 %v1272_v43 }
 0x1be   :  { %v436_v3 = vadd.f32 %v1111_v1, %v1521_v47  ;;  %v430_v4 = vpop.f32.mrb[7].mxu1  ;;  %1277 = vmatprep.subr.bf16.mxu0 %v1276_v46 }
 0x1bf   :  { %v431_v5 = vadd.f32 %v1521_v47, %v430_v4  ;;  %1162 = vmatprep.mubr.f32.mxu0 %v483_v0 }
 0x1c0   :  { %1163 = vmatmul.mubr.f32.gmra.mrb[20].mxu0 %v484_v2  ;;  %v486_v8 = vmax.f32 %v436_v3, 0.0 }
 0x1c1   :  { %v485_v6 = vmax.f32 %v431_v5, 0.0  ;;  %v1114_v7 = vpop.f32.mrb[8].mxu1  ;;  %1279 = vmatpush3.bf16.msra.mxu0 %v1276_v46 }
 0x1c2   :  { %v446_v9 = vadd.f32 %v1114_v7, %v1521_v47  ;;  %v440_v10 = vpop.f32.mrb[9].mxu1  ;;  %1281 = vmatprep.subr.bf16.mxu0 %v1280_v34 }
 0x1c3   :  { %v441_v11 = vadd.f32 %v1521_v47, %v440_v10  ;;  %1165 = vmatprep.mubr.f32.mxu0 %v485_v6 }
 0x1c4   :  { %1166 = vmatmul.mubr.f32.gmra.mrb[22].mxu0 %v486_v8  ;;  %v488_v14 = vmax.f32 %v446_v9, 0.0 }
 0x1c5   :  { %v487_v12 = vmax.f32 %v441_v11, 0.0  ;;  %v1117_v13 = vpop.f32.mrb[10].mxu1  ;;  %1283 = vmatpush3.bf16.msra.mxu0 %v1280_v34 }
 0x1c6   :  { %v456_v15 = vadd.f32 %v1117_v13, %v1521_v47  ;;  %v450_v16 = vpop.f32.mrb[11].mxu1 }
 0x1c7   :  { %v451_v17 = vadd.f32 %v1521_v47, %v450_v16  ;;  %1168 = vmatprep.mubr.f32.mxu0 %v487_v12 }
 0x1c8   :  { %1169 = vmatmul.mubr.f32.gmra.mrb[24].mxu0 %v488_v14  ;;  %v490_v20 = vmax.f32 %v456_v15, 0.0 }
 0x1c9   :  { %v489_v18 = vmax.f32 %v451_v17, 0.0  ;;  %v1120_v19 = vpop.f32.mrb[12].mxu1 }
 0x1ca   :  { %v466_v21 = vadd.f32 %v1120_v19, %v1521_v47  ;;  %v460_v22 = vpop.f32.mrb[13].mxu1 }
 0x1cb   :  { %v461_v23 = vadd.f32 %v1521_v47, %v460_v22  ;;  %1171 = vmatprep.mubr.f32.mxu0 %v489_v18 }
 0x1cc   :  { %1172 = vmatmul.mubr.f32.gmra.mrb[26].mxu0 %v490_v20  ;;  %v492_v26 = vmax.f32 %v466_v21, 0.0  ;;  %v944_v20 = vld [vmem:[%s1639_s8] ss:$0 sm:$0xff] }
 0x1cd   :  { %v491_v24 = vmax.f32 %v461_v23, 0.0  ;;  %v1123_v25 = vpop.f32.mrb[14].mxu1 }
 0x1ce   :  { %v476_v27 = vadd.f32 %v1123_v25, %v1521_v47  ;;  %v470_v28 = vpop.f32.mrb[15].mxu1 }
 0x1cf   :  { %v471_v29 = vadd.f32 %v1521_v47, %v470_v28  ;;  %1174 = vmatprep.mubr.f32.mxu0 %v491_v24 }
 0x1d0   :  { %1175 = vmatmul.mubr.f32.gmra.mrb[28].mxu0 %v492_v26  ;;  %v494_v31 = vmax.f32 %v476_v27, 0.0 }
 0x1d1   :  { %v493_v30 = vmax.f32 %v471_v29, 0.0 }
 0x1d3   :  { %1177 = vmatprep.mubr.f32.mxu0 %v493_v30 }
 0x1d4   :  { %1178 = vmatmul.mubr.f32.gmra.mrb[30].mxu0 %v494_v31 }
 0x28b   :  { %v1158_v36 = vpop.f32.mrb[16].mxu0 }
 0x28c   :  { %v590_v37 = vadd.f32 %v1158_v36, %v943_v35  ;;  %v584_v38 = vpop.f32.mrb[17].mxu0 }
 0x28d   :  { %v585_v39 = vadd.f32 %v943_v35, %v584_v38 }
 0x28e   :  { %v664_v42 = vmax.f32 %v590_v37, 0.0 }
 0x28f   :  { %v663_v40 = vmax.f32 %v585_v39, 0.0  ;;  %v1161_v41 = vpop.f32.mrb[18].mxu0 }
 0x290   :  { %v600_v43 = vadd.f32 %v1161_v41, %v943_v35  ;;  %v594_v44 = vpop.f32.mrb[19].mxu0 }
 0x291   :  { %v595_v45 = vadd.f32 %v943_v35, %v594_v44  ;;  %1196 = vmatprep.mubr.msk.f32.mxu0 %vm285_vm2, %v663_v40 }
 0x292   :  { %1197 = vmatmul.mubr.msk.f32.vlgmr.msra.gmra.mrb[32].mxu0 %vm285_vm2, %v664_v42  ;;  %v666_v48 = vmax.f32 %v600_v43, 0.0 }
 0x293   :  { %v665_v46 = vmax.f32 %v595_v45, 0.0  ;;  %v1164_v47 = vpop.f32.mrb[20].mxu0 }
 0x294   :  { %v610_v49 = vadd.f32 %v1164_v47, %v943_v35  ;;  %v604_v50 = vpop.f32.mrb[21].mxu0 }
 0x295   :  { %v605_v51 = vadd.f32 %v943_v35, %v604_v50  ;;  %1199 = vmatprep.mubr.msk.f32.mxu1 %vm285_vm2, %v665_v46 }
 0x296   :  { %1200 = vmatmul.mubr.msk.f32.vlgmr.msra.gmra.mrb[16].mxu1 %vm285_vm2, %v666_v48  ;;  %v668_v54 = vmax.f32 %v610_v49, 0.0 }
 0x297   :  { %v667_v52 = vmax.f32 %v605_v51, 0.0  ;;  %v1167_v53 = vpop.f32.mrb[22].mxu0 }
 0x298   :  { %v620_v55 = vadd.f32 %v1167_v53, %v943_v35  ;;  %v614_v56 = vpop.f32.mrb[23].mxu0 }
 0x299   :  { %v615_v57 = vadd.f32 %v943_v35, %v614_v56  ;;  %1202 = vmatprep.mubr.msk.f32.mxu1 %vm285_vm2, %v667_v52 }
 0x29a   :  { %1203 = vmatmul.mubr.msk.f32.gmra.mrb[18].mxu1 %vm285_vm2, %v668_v54  ;;  %v670_v60 = vmax.f32 %v620_v55, 0.0 }
 0x29b   :  { %v669_v58 = vmax.f32 %v615_v57, 0.0  ;;  %v1170_v59 = vpop.f32.mrb[24].mxu0 }
 0x29c   :  { %v630_v61 = vadd.f32 %v1170_v59, %v943_v35  ;;  %v624_v62 = vpop.f32.mrb[25].mxu0 }
 0x29d   :  { %v625_v63 = vadd.f32 %v943_v35, %v624_v62  ;;  %1205 = vmatprep.mubr.msk.f32.mxu1 %vm285_vm2, %v669_v58 }
 0x29e   :  { %1206 = vmatmul.mubr.msk.f32.gmra.mrb[20].mxu1 %vm285_vm2, %v670_v60  ;;  %v672_v2 = vmax.f32 %v630_v61, 0.0 }
 0x29f   :  { %v671_v0 = vmax.f32 %v625_v63, 0.0  ;;  %v1173_v1 = vpop.f32.mrb[26].mxu0 }
 0x2a0   :  { %v640_v3 = vadd.f32 %v1173_v1, %v943_v35  ;;  %v634_v4 = vpop.f32.mrb[27].mxu0 }
 0x2a1   :  { %v635_v5 = vadd.f32 %v943_v35, %v634_v4  ;;  %1208 = vmatprep.mubr.msk.f32.mxu1 %vm285_vm2, %v671_v0 }
 0x2a2   :  { %1209 = vmatmul.mubr.msk.f32.gmra.mrb[22].mxu1 %vm285_vm2, %v672_v2  ;;  %v674_v8 = vmax.f32 %v640_v3, 0.0 }
 0x2a3   :  { %v673_v6 = vmax.f32 %v635_v5, 0.0  ;;  %v1176_v7 = vpop.f32.mrb[28].mxu0 }
 0x2a4   :  { %v650_v9 = vadd.f32 %v1176_v7, %v943_v35  ;;  %v644_v10 = vpop.f32.mrb[29].mxu0 }
 0x2a5   :  { %v645_v11 = vadd.f32 %v943_v35, %v644_v10  ;;  %1211 = vmatprep.mubr.msk.f32.mxu1 %vm285_vm2, %v673_v6 }
 0x2a6   :  { %1212 = vmatmul.mubr.msk.f32.gmra.mrb[24].mxu1 %vm285_vm2, %v674_v8  ;;  %v676_v14 = vmax.f32 %v650_v9, 0.0 }
 0x2a7   :  { %v675_v12 = vmax.f32 %v645_v11, 0.0  ;;  %v1179_v13 = vpop.f32.mrb[30].mxu0 }
 0x2a8   :  { %v660_v15 = vadd.f32 %v1179_v13, %v943_v35  ;;  %v654_v16 = vpop.f32.mrb[31].mxu0 }
 0x2a9   :  { %v655_v17 = vadd.f32 %v943_v35, %v654_v16  ;;  %1214 = vmatprep.mubr.msk.f32.mxu1 %vm285_vm2, %v675_v12 }
 0x2aa   :  { %1215 = vmatmul.mubr.msk.f32.gmra.mrb[26].mxu1 %vm285_vm2, %v676_v14  ;;  %v678_v19 = vmax.f32 %v660_v15, 0.0 }
 0x2ab   :  { %v677_v18 = vmax.f32 %v655_v17, 0.0 }
 0x2ad   :  { %1217 = vmatprep.mubr.msk.f32.mxu1 %vm285_vm2, %v677_v18 }
 0x2ae   :  { %1218 = vmatmul.mubr.msk.f32.gmra.mrb[28].mxu1 %vm285_vm2, %v678_v19 }
 0x365   :  { %v1198_v21 = vpop.f32.mrb[32].mxu0 }
 0x366   :  { %v814_v22 = vadd.f32 %v1198_v21, %v944_v20  ;;  %v808_v23 = vpop.f32.mrb[33].mxu0 }
 0x367   :  { %v809_v24 = vadd.f32 %v944_v20, %v808_v23 }
 0x368   :  { %889 = vst.msk [vmem:[%s1640_s9 + $0x8] sm:$0xff] %vm887_vm3, %v814_v22 }
 0x369   :  { %888 = vst.msk [vmem:[%s1640_s9] sm:$0xff] %vm887_vm3, %v809_v24  ;;  %v1201_v25 = vpop.f32.mrb[16].mxu1 }
 0x36a   :  { %v824_v26 = vadd.f32 %v1201_v25, %v944_v20  ;;  %v818_v27 = vpop.f32.mrb[17].mxu1 }
 0x36b   :  { %v819_v28 = vadd.f32 %v944_v20, %v818_v27 }
 0x36c   :  { %891 = vst.msk [vmem:[%s1640_s9 + $0x18] sm:$0xff] %vm887_vm3, %v824_v26 }
 0x36d   :  { %890 = vst.msk [vmem:[%s1640_s9 + $0x10] sm:$0xff] %vm887_vm3, %v819_v28  ;;  %v1204_v29 = vpop.f32.mrb[18].mxu1 }
 0x36e   :  { %v834_v30 = vadd.f32 %v1204_v29, %v944_v20  ;;  %v828_v31 = vpop.f32.mrb[19].mxu1 }
 0x36f   :  { %v829_v32 = vadd.f32 %v944_v20, %v828_v31 }
 0x370   :  { %893 = vst.msk [vmem:[%s1640_s9 + $0x28] sm:$0xff] %vm887_vm3, %v834_v30 }
 0x371   :  { %892 = vst.msk [vmem:[%s1640_s9 + $0x20] sm:$0xff] %vm887_vm3, %v829_v32  ;;  %v1207_v33 = vpop.f32.mrb[20].mxu1 }
 0x372   :  { %v844_v34 = vadd.f32 %v1207_v33, %v944_v20  ;;  %v838_v35 = vpop.f32.mrb[21].mxu1 }
 0x373   :  { %v839_v36 = vadd.f32 %v944_v20, %v838_v35 }
 0x374   :  { %895 = vst.msk [vmem:[%s1640_s9 + $0x38] sm:$0xff] %vm887_vm3, %v844_v34 }
 0x375   :  { %894 = vst.msk [vmem:[%s1640_s9 + $0x30] sm:$0xff] %vm887_vm3, %v839_v36  ;;  %v1210_v37 = vpop.f32.mrb[22].mxu1 }
 0x376   :  { %v854_v38 = vadd.f32 %v1210_v37, %v944_v20  ;;  %v848_v39 = vpop.f32.mrb[23].mxu1 }
 0x377   :  { %v849_v40 = vadd.f32 %v944_v20, %v848_v39 }
 0x378   :  { %897 = vst.msk [vmem:[%s1640_s9 + $0x48] sm:$0xff] %vm887_vm3, %v854_v38 }
 0x379   :  { %896 = vst.msk [vmem:[%s1640_s9 + $0x40] sm:$0xff] %vm887_vm3, %v849_v40  ;;  %v1213_v41 = vpop.f32.mrb[24].mxu1 }
 0x37a   :  { %v864_v42 = vadd.f32 %v1213_v41, %v944_v20  ;;  %v858_v43 = vpop.f32.mrb[25].mxu1 }
 0x37b   :  { %v859_v44 = vadd.f32 %v944_v20, %v858_v43 }
 0x37c   :  { %899 = vst.msk [vmem:[%s1640_s9 + $0x58] sm:$0xff] %vm887_vm3, %v864_v42 }
 0x37d   :  { %898 = vst.msk [vmem:[%s1640_s9 + $0x50] sm:$0xff] %vm887_vm3, %v859_v44  ;;  %v1216_v45 = vpop.f32.mrb[26].mxu1 }
 0x37e   :  { %v874_v46 = vadd.f32 %v1216_v45, %v944_v20  ;;  %v868_v47 = vpop.f32.mrb[27].mxu1 }
 0x37f   :  { %v869_v48 = vadd.f32 %v944_v20, %v868_v47 }
 0x380   :  { %901 = vst.msk [vmem:[%s1640_s9 + $0x68] sm:$0xff] %vm887_vm3, %v874_v46 }
 0x381   :  { %900 = vst.msk [vmem:[%s1640_s9 + $0x60] sm:$0xff] %vm887_vm3, %v869_v48  ;;  %v1219_v49 = vpop.f32.mrb[28].mxu1 }
 0x382   :  { %v884_v50 = vadd.f32 %v1219_v49, %v944_v20  ;;  %v878_v51 = vpop.f32.mrb[29].mxu1 }
 0x383   :  { %v879_v52 = vadd.f32 %v944_v20, %v878_v51 }
 0x384   :  { %903 = vst.msk [vmem:[%s1640_s9 + $0x78] sm:$0xff] %vm887_vm3, %v884_v50 }
 0x385   :  { %902 = vst.msk [vmem:[%s1640_s9 + $0x70] sm:$0xff] %vm887_vm3, %v879_v52 }

</bundles_post_ra>
